<compile_context>
chip_gen: v6e
topology: v6e:2x2x1
jax: 0.10.0
libtpu: 0.0.40
codegen_flags: <defaults>
</compile_context>

<pallas_src>
import functools

import jax
import jax.numpy as jnp
from jax.experimental import pallas as pl
from jax.experimental.pallas import tpu as pltpu


def _label_encoder_kernel(labels_ref, table_ref, mu_ref, var_ref, *,
                          num_labels, latent_dim):
    labels = labels_ref[...]                                    # (TB, 1) int32
    tb = labels.shape[0]
    classes = jax.lax.broadcasted_iota(jnp.int32, (tb, num_labels), 1)
    onehot = (classes == labels).astype(jnp.float32)            # (TB, num_labels)
    # Single MXU pass for both heads; exact row-gather since onehot is 0/1 f32.
    emb = jnp.dot(onehot, table_ref[...],
                  preferred_element_type=jnp.float32)           # (TB, 2*D)
    mu_ref[...] = emb[:, :latent_dim]
    var_ref[...] = jnp.exp(emb[:, latent_dim:])                 # EUP exp, same kernel


def label_encoder_forward(params, labels):
    mu_w = params["classemb_mu"]      # (num_labels, D)
    var_w = params["classemb_var"]    # (num_labels, D)
    num_labels, d = mu_w.shape
    # Fuse both heads into one lane-denser table (num_labels, 2*D).
    table = jnp.concatenate([mu_w, var_w], axis=1)

    b = labels.shape[0]
    labels2d = labels.astype(jnp.int32).reshape(b, 1)
    tb = b if b <= 128 else 128
    grid = (pl.cdiv(b, tb),)

    kernel = functools.partial(_label_encoder_kernel,
                               num_labels=num_labels, latent_dim=d)
    mu, var = pl.pallas_call(
        kernel,
        out_shape=(jax.ShapeDtypeStruct((b, d), jnp.float32),
                   jax.ShapeDtypeStruct((b, d), jnp.float32)),
        grid=grid,
        in_specs=[pl.BlockSpec((tb, 1), lambda i: (i, 0)),            # labels tile
                  pl.BlockSpec((num_labels, 2 * d), lambda i: (0, 0))],  # full table
        out_specs=(pl.BlockSpec((tb, d), lambda i: (i, 0)),
                   pl.BlockSpec((tb, d), lambda i: (i, 0))),
        compiler_params=pltpu.CompilerParams(
            dimension_semantics=("parallel",)),
    )(labels2d, table)
    return mu, var


def init_params(key, num_labels, latent_dim):
    k_mu, k_var = jax.random.split(key)
    # nn.Embedding default init: N(0, 1)
    return {
        "classemb_mu": jax.random.normal(k_mu, (num_labels, latent_dim),
                                         jnp.float32),
        "classemb_var": jax.random.normal(k_var, (num_labels, latent_dim),
                                          jnp.float32),
    }


if __name__ == "__main__":
    key = jax.random.PRNGKey(0)
    k_params, k_labels = jax.random.split(key)

    num_labels = 10
    latent_dim = 32
    batch = 8

    params = init_params(k_params, num_labels, latent_dim)
    labels = jax.random.randint(k_labels, (batch,), 0, num_labels,
                                dtype=jnp.int32)

    mu, var = label_encoder_forward(params, labels)
    (mu, var) = jax.block_until_ready((mu, var))

    # Pure-JAX reference (same semantics as the PyTorch module).
    mu_ref = params["classemb_mu"][labels]
    var_ref = jnp.exp(params["classemb_var"][labels])

    assert mu.shape == (batch, latent_dim) and var.shape == (batch, latent_dim)
    assert jnp.allclose(mu, mu_ref, atol=1e-6, rtol=1e-6)
    assert jnp.allclose(var, var_ref, atol=1e-5, rtol=1e-5)
    assert bool(jnp.all(var > 0))
    print("KERNEL_OK")
</pallas_src>

<mosaic_0001>
module attributes {stable_mosaic.version = 11 : i64} {
  func.func @_label_encoder_kernel(%arg0: i32, %arg1: memref<8x1xi32, #tpu.memory_space<vmem>>, %arg2: memref<10x64xf32, #tpu.memory_space<vmem>>, %arg3: memref<8x32xf32, #tpu.memory_space<vmem>>, %arg4: memref<8x32xf32, #tpu.memory_space<vmem>>) attributes {dimension_semantics = [#tpu.dimension_semantics<parallel>], iteration_bounds = array<i64: 1>, scalar_prefetch = 0 : i64, scratch_operands = 0 : i64, tpu.core_type = #tpu.core_type<tc>, window_params = [{transform_indices = @transform_0, window_bounds = array<i64: 8, 1>}, {pipeline_mode = #tpu.pipeline_mode<synchronous>, transform_indices = @transform_1, window_bounds = array<i64: 10, 64>}, {transform_indices = @transform_2, window_bounds = array<i64: 8, 32>}, {transform_indices = @transform_3, window_bounds = array<i64: 8, 32>}]} {
    %c0 = arith.constant 0 : index
    %c0_0 = arith.constant 0 : index
    %0 = vector.load %arg1[%c0, %c0_0] : memref<8x1xi32, #tpu.memory_space<vmem>>, vector<8x1xi32>
    %1 = tpu.iota {dimensions = array<i32: 1>} : vector<8x10xi32>
    %2 = vector.broadcast %0 : vector<8x1xi32> to vector<8x10xi32>
    %3 = arith.cmpi eq, %1, %2 : vector<8x10xi32>
    %4 = arith.extui %3 : vector<8x10xi1> to vector<8x10xi32>
    %5 = arith.sitofp %4 : vector<8x10xi32> to vector<8x10xf32>
    %c0_1 = arith.constant 0 : index
    %c0_2 = arith.constant 0 : index
    %6 = vector.load %arg2[%c0_1, %c0_2] : memref<10x64xf32, #tpu.memory_space<vmem>>, vector<10x64xf32>
    %cst = arith.constant dense<0.000000e+00> : vector<8x64xf32>
    %7 = tpu.matmul %5, %6, %cst {dimension_numbers = #tpu.dot_dimension_numbers<[1], [0], [0], [1], [0, 0, 1, 1], [], []>} : vector<8x10xf32>, vector<10x64xf32>, vector<8x64xf32> -> vector<8x64xf32>
    %8 = vector.extract_strided_slice %7 {offsets = [0, 0], sizes = [8, 32], strides = [1, 1]} : vector<8x64xf32> to vector<8x32xf32>
    %c0_3 = arith.constant 0 : index
    %c0_4 = arith.constant 0 : index
    %9 = vector.load %arg3[%c0_3, %c0_4] : memref<8x32xf32, #tpu.memory_space<vmem>>, vector<8x32xf32>
    tpu.vector_store %arg3[%c0_3, %c0_4], %8 {strides = array<i32>} : memref<8x32xf32, #tpu.memory_space<vmem>>, vector<8x32xf32>,
    %10 = vector.extract_strided_slice %7 {offsets = [0, 32], sizes = [8, 32], strides = [1, 1]} : vector<8x64xf32> to vector<8x32xf32>
    %11 = math.exp %10 : vector<8x32xf32>
    %c0_5 = arith.constant 0 : index
    %c0_6 = arith.constant 0 : index
    %12 = vector.load %arg4[%c0_5, %c0_6] : memref<8x32xf32, #tpu.memory_space<vmem>>, vector<8x32xf32>
    tpu.vector_store %arg4[%c0_5, %c0_6], %11 {strides = array<i32>} : memref<8x32xf32, #tpu.memory_space<vmem>>, vector<8x32xf32>,
    return
  }
  func.func @transform_0(%arg0: i32) -> (i32, i32) {
    %c0_i32 = arith.constant 0 : i32
    %c0_i32_0 = arith.constant 0 : i32
    return %arg0, %c0_i32 : i32, i32
  }
  func.func @transform_1(%arg0: i32) -> (i32, i32) {
    %c0_i32 = arith.constant 0 : i32
    %c0_i32_0 = arith.constant 0 : i32
    %c0_i32_1 = arith.constant 0 : i32
    return %c0_i32, %c0_i32_0 : i32, i32
  }
  func.func @transform_2(%arg0: i32) -> (i32, i32) {
    %c0_i32 = arith.constant 0 : i32
    %c0_i32_0 = arith.constant 0 : i32
    return %arg0, %c0_i32 : i32, i32
  }
  func.func @transform_3(%arg0: i32) -> (i32, i32) {
    %c0_i32 = arith.constant 0 : i32
    %c0_i32_0 = arith.constant 0 : i32
    return %arg0, %c0_i32 : i32, i32
  }
}

</mosaic_0001>

<bundles_post_ra>
// kernel: tpu_custom_call.1
= control target key start
LH: loop header
LB: loop body
LE: loop exit
PB: predicated region body
PF: predicated region fallthrough
CT: control target
= control target key end

     0   :  { %9 = vsyncpa [#allocation3], 0  ;;  %s290_s0 = inlined_call_operand.vmem [shape: s32[8,1], index: 0, kind: input, shape index: {}]   ;;  %s291_s1 = inlined_call_operand.hbm [shape: f32[10,64], index: 1, kind: input, shape index: {}]   ;;  %s292_s2 = inlined_call_operand.hbm [shape: f32[8,32], index: 2, kind: output, shape index: {0}]   ;;  %s293_s3 = inlined_call_operand.hbm [shape: f32[8,32], index: 3, kind: output, shape index: {1}]  }
   0x1   :  { %10 = vsyncpa [#allocation4], 0 }
   0x2   :  { %11 = vsyncpa [#allocation7], 0  ;;  %s247_s12 = smov [#allocation2]  }
   0x3   :  { %s19_s13 = sshll.u32 %s247_s12, 4  ;;  %s20_s13 = int_to_ptr.vmem [resolvable:$true] %s19_s13 }
   0x4   :  { %s189_s14 = scalar_lea.vmem %s20_s13, 256  ;;  %p194_p1 = scmp.lt.s32.totalorder %s20_s13, %s20_s13 }
   0x5   :  { %p190_p0 = scmp.ne.s32.totalorder %s20_s13, %s189_s14  ;;  %p195_p2 = scmp.lt.s32.totalorder %s189_s14, %s189_s14 }
   0x7   :  { %p196_p3 = por %p195_p2, %p194_p1 }
   0x9   :  { %p197_p4 = pnand %p196_p3, %p190_p0 }
   0xb   :  { %200 = shalt.err (!%p197_p4)
}
   0xc   :  { %s248_s15 = smov 128   ;;  %s249_s16 = smov 8  }
   0xd   :  { %25 = dma.hbm_to_vmem [thread:$0]  %s291_s1, 256, %s20_s13, [#allocation3], %s248_s15, %s248_s15, %s249_s16  }
   0xe   :  { %241 = dma.done.wait [#allocation3], 256  }
   0xf   :  { %242 = vsyncadd [#allocation3], 4294967040  ;;  %v250_v0 = vmov 0   ;;  %v251_v1 = vmov 0.0   ;;  %vm44_vm0 = vcmask 1041408   ;;  %vm252_vm1 = vmmov 0  }
  0x10   :  { %178 = vset.pattern.permute.xlu0 %v250_v0  ;;  %162 = vmatprep.subr.mxu0 %v251_v1  ;;  %v29_v2 = vld [vmem:[%s290_s0] sm:$0xff]  ;;  %v39_v3 = vld [vmem:[#allocation2 + $0x8] sm:$0x3]  ;;  %v30_v5 = vlaneseq  ;;  %vm40_vm2 = vcmask 80896   ;;  %vm118_vm4 = vcmask 261120   ;;  %s253_s0 = smov [#allocation5]  }
  0x11   :  { %166 = vmatprep.mubr.msk.f32.mxu0 %vm252_vm1, %v251_v1  ;;  %v38_v4 = vld [vmem:[#allocation2] sm:$0xff]  ;;  %33 = vperm.xlu0 %178, %v29_v2   ;;  %s133_s1 = sshll.u32 %s253_s0, 4  ;;  %s134_s1 = int_to_ptr.vmem [resolvable:$true] %s133_s1 }
  0x12   :  { %163 = vmatpush3.msk.msra.mxu0 %vm44_vm0, %v39_v3  ;;  %v31_v6 = vand.u32 127, %v30_v5  ;;  %s201_s21 = scalar_lea.vmem %s134_s1, 128  ;;  %p206_p6 = scmp.lt.s32.totalorder %s134_s1, %s134_s1 }
  0x13   :  { %164 = vmatprep.subr.mxu0 %v251_v1  ;;  %p202_p5 = scmp.ne.s32.totalorder %s134_s1, %s201_s21  ;;  %p207_p7 = scmp.lt.s32.totalorder %s201_s21, %s201_s21 }
  0x14   :  { %165 = vmatpush3.msra.mxu0 %v38_v4 }
  0x15   :  { %p208_p8 = por %p207_p7, %p206_p6 }
  0x17   :  { %p209_p9 = pnand %p208_p8, %p202_p5 }
  0x8c   :  { %v34_v7 = vpop.permute.xlu0 %33 }
  0x8d   :  { %vm35_vm3 = vcmp.eq.s32.totalorder %v31_v6, %v34_v7 }
  0x8e   :  { %v156_v8 = vsel %vm35_vm3, 1.0, %v251_v1 }
  0x8f   :  { %167 = vmatmul.mubr.msk.f32.vlgmr.msra.gmra.mxu0 %vm40_vm2, %v156_v8 }
 0x14f   :  { %v114_v9 = vpop.f32.mrf.mxu0 }
 0x150   :  { %v120_v10 = vmul.f32 1.442695, %v114_v9  ;;  %119 = vst.msk [vmem:[#allocation5] sm:$0xff] %vm118_vm4, %v114_v9 }
 0x151   :  { %v168_v11 = vpop.f32.mrf.mxu0 }
 0x152   :  { %179 = vpow2.f32 %v120_v10 }
 0x153   :  { %212 = shalt.err (!%p209_p9)
}
 0x154   :  { %136 = dma.vmem_to_hbm [thread:$0]  %s134_s1, 128, %s292_s2, [#allocation4]  }
 0x155   :  { %s254_s24 = smov 96   ;;  %s255_s25 = smov [#allocation6]  }
 0x156   :  { %s143_s26 = sshll.u32 %s255_s25, 4  ;;  %s144_s26 = int_to_ptr.vmem [resolvable:$true] %s143_s26 }
 0x157   :  { %s221_s27 = scalar_lea.vmem %s144_s26, 128  ;;  %p226_p11 = scmp.lt.s32.totalorder %s144_s26, %s144_s26 }
 0x158   :  { %p222_p10 = scmp.ne.s32.totalorder %s144_s26, %s221_s27  ;;  %p227_p12 = scmp.lt.s32.totalorder %s221_s27, %s221_s27 }
 0x15a   :  { %p228_p13 = por %p227_p12, %p226_p11 }
 0x15c   :  { %p229_p0 = pnand %p228_p13, %p222_p10 }
 0x15f   :  { %v180_v12 = vpop.eup %179 }
 0x160   :  { %123 = vrot.lane.b32.xlu0 %v180_v12, %s254_s24 }
 0x1d2   :  { %v124_v13 = vpop.permute.xlu0 %123 }
 0x1d3   :  { %126 = vst.msk [vmem:[#allocation6] sm:$0xff] %vm118_vm4, %v124_v13 }
 0x1d4   :  { %232 = shalt.err (!%p229_p0)
}
 0x1d5   :  { %146 = dma.vmem_to_hbm [thread:$0]  %s144_s26, 128, %s293_s3, [#allocation7]  }
 0x1d6   :  { %243 = dma.done.wait [#allocation4], 128  }
 0x1d7   :  { %244 = vsyncadd [#allocation4], 4294967168 }
 0x1d8   :  { %245 = dma.done.wait [#allocation7], 128  }
 0x1d9   :  { %246 = vsyncadd [#allocation7], 4294967168 }
 0x1da   :  { %153 = vsyncpa [#allocation3], 1 }
 0x1db   :  { %154 = vsyncpa [#allocation4], 1 }
 0x1dc   :  { %155 = vsyncpa [#allocation7], 1 }

</bundles_post_ra>
